<compile_context>
chip_gen: v7x
topology: tpu7x:2x2x1
jax: 0.10.0
libtpu: 0.0.40
codegen_flags: <defaults>
</compile_context>

<pallas_src>
import functools

import jax
import jax.numpy as jnp
from jax.experimental import pallas as pl
from jax.experimental.pallas import tpu as pltpu

_BN_EPS = 1e-5


# ------------------------------ fused kernel ------------------------------- #

def _make_decoder_kernel(modes):
    """Build the fused decoder kernel body.

    modes: tuple with one entry per Linear layer:
      "bn_relu" -> Linear + BatchNorm1d(batch stats) + ReLU ; params = (W, [b;gamma;beta] (3,N))
      "linear"  -> Linear                                   ; params = (W, b (1,N))
      "sigmoid" -> Linear + Sigmoid (final layer)           ; params = (W, b (1,N))

    Kernel signature: kernel(x_ref, *per_layer_refs, o_ref) with 2 refs per layer.
    """

    def kernel(*refs):
        x_ref = refs[0]
        o_ref = refs[-1]
        prefs = refs[1:-1]

        h = x_ref[...]
        for li, mode in enumerate(modes):
            w = prefs[2 * li][...]          # (in, out)  == W^T of the PyTorch Linear
            p = prefs[2 * li + 1][...]      # (3, out) packed or (1, out) bias
            if mode == "bn_relu":
                y = jnp.dot(h, w, preferred_element_type=jnp.float32) + p[0:1, :]
                # One-pass batch statistics (biased variance, PyTorch training-mode BN).
                mean = jnp.mean(y, axis=0, keepdims=True)
                ey2 = jnp.mean(y * y, axis=0, keepdims=True)
                var = jnp.maximum(ey2 - mean * mean, 0.0)
                yhat = (y - mean) * jax.lax.rsqrt(var + _BN_EPS)
                h = jnp.maximum(p[1:2, :] * yhat + p[2:3, :], 0.0)
            elif mode == "sigmoid":
                y = jnp.dot(h, w, preferred_element_type=jnp.float32) + p
                h = jax.nn.sigmoid(y)
            else:  # plain linear hidden layer (use_linear_projection=True)
                h = jnp.dot(h, w, preferred_element_type=jnp.float32) + p

        o_ref[...] = h.astype(o_ref.dtype)

    return kernel


# ------------------------------ jitted wrapper ------------------------------ #

@functools.partial(jax.jit, static_argnums=(0,))
def decoder_forward(modes, flat_params, x):
    """Fused Decoder forward.

    modes       : static tuple of layer modes (see _make_decoder_kernel).
    flat_params : tuple of arrays, 2 per layer, in kernel-argument order.
    x           : (batch, feature_dim) float32.
    """
    batch = x.shape[0]
    out_dim = flat_params[-2].shape[1]   # final layer weight is (in, out)

    vmem = pl.BlockSpec(memory_space=pltpu.MemorySpace.VMEM)
    return pl.pallas_call(
        _make_decoder_kernel(modes),
        in_specs=[vmem] * (1 + len(flat_params)),
        out_specs=vmem,
        out_shape=jax.ShapeDtypeStruct((batch, out_dim), jnp.float32),
    )(x, *flat_params)


# --------------------------- parameter construction ------------------------- #

def _init_linear(key, in_dim, out_dim):
    """PyTorch nn.Linear default init: U(-1/sqrt(in), 1/sqrt(in)); W stored as (in, out)."""
    kw, kb = jax.random.split(key)
    bound = 1.0 / jnp.sqrt(jnp.float32(in_dim))
    w = jax.random.uniform(kw, (in_dim, out_dim), jnp.float32, -bound, bound)
    b = jax.random.uniform(kb, (out_dim,), jnp.float32, -bound, bound)
    return w, b


def build_decoder(key, feature_dim, output_dim, middle_dims=(256, 512, 1024),
                  use_linear_projection=False):
    """Returns (modes, flat_params) for decoder_forward."""
    dims = [feature_dim] + list(middle_dims) + [output_dim]
    n_hidden = len(dims) - 2
    keys = jax.random.split(key, n_hidden + 1)

    modes = []
    flat = []
    for i in range(n_hidden):
        w, b = _init_linear(keys[i], dims[i], dims[i + 1])
        if use_linear_projection:
            modes.append("linear")
            flat.extend([w, b.reshape(1, -1)])
        else:
            gamma = jnp.ones((dims[i + 1],), jnp.float32)   # BN weight init
            beta = jnp.zeros((dims[i + 1],), jnp.float32)   # BN bias init
            modes.append("bn_relu")
            flat.extend([w, jnp.stack([b, gamma, beta], axis=0)])   # (3, N) packed slab

    w, b = _init_linear(keys[-1], dims[-2], dims[-1])
    modes.append("sigmoid")
    flat.extend([w, b.reshape(1, -1)])
    return tuple(modes), tuple(flat)


# ---------------------------- pure-JAX reference ---------------------------- #

def _ref_decoder(modes, flat_params, x):
    h = x
    for li, mode in enumerate(modes):
        w = flat_params[2 * li]
        p = flat_params[2 * li + 1]
        if mode == "bn_relu":
            y = h @ w + p[0]
            mean = jnp.mean(y, axis=0, keepdims=True)
            var = jnp.mean(jnp.square(y - mean), axis=0, keepdims=True)  # biased, two-pass
            y = p[1] * (y - mean) * jax.lax.rsqrt(var + _BN_EPS) + p[2]
            h = jnp.maximum(y, 0.0)
        elif mode == "sigmoid":
            h = jax.nn.sigmoid(h @ w + p[0])
        else:
            h = h @ w + p[0]
    return h


# ----------------------------------- main ----------------------------------- #

if __name__ == "__main__":
    key = jax.random.PRNGKey(0)
    kparam, kparam2, kx = jax.random.split(key, 3)

    batch = 8
    feature_dim = 16
    output_dim = 48
    middle_dims = (32, 64)

    x = jax.random.uniform(kx, (batch, feature_dim), jnp.float32)

    # Default path: Linear + BatchNorm1d + ReLU hidden layers, final Linear + Sigmoid.
    modes, flat = build_decoder(kparam, feature_dim, output_dim, middle_dims,
                                use_linear_projection=False)
    out = jax.block_until_ready(decoder_forward(modes, flat, x))
    ref = _ref_decoder(modes, flat, x)
    assert out.shape == (batch, output_dim)
    assert jnp.allclose(out, ref, atol=1e-4, rtol=1e-4), "decoder (BN path) mismatch"
    assert bool(jnp.all((out >= 0.0) & (out <= 1.0))), "sigmoid output out of range"

    # Linear-projection path (hidden layers are plain Linear).
    modes_lp, flat_lp = build_decoder(kparam2, feature_dim, output_dim, middle_dims,
                                      use_linear_projection=True)
    out_lp = jax.block_until_ready(decoder_forward(modes_lp, flat_lp, x))
    ref_lp = _ref_decoder(modes_lp, flat_lp, x)
    assert out_lp.shape == (batch, output_dim)
    assert jnp.allclose(out_lp, ref_lp, atol=1e-4, rtol=1e-4), "decoder (linear path) mismatch"

    print("KERNEL_OK")
</pallas_src>

<mosaic_0001>
module attributes {stable_mosaic.version = 11 : i64} {
  func.func @kernel(%arg0: memref<8x16xf32, #tpu.memory_space<vmem>>, %arg1: memref<16x32xf32, #tpu.memory_space<vmem>>, %arg2: memref<3x32xf32, #tpu.memory_space<vmem>>, %arg3: memref<32x64xf32, #tpu.memory_space<vmem>>, %arg4: memref<3x64xf32, #tpu.memory_space<vmem>>, %arg5: memref<64x48xf32, #tpu.memory_space<vmem>>, %arg6: memref<1x48xf32, #tpu.memory_space<vmem>>, %arg7: memref<8x48xf32, #tpu.memory_space<vmem>>) attributes {dimension_semantics = [], scalar_prefetch = 0 : i64, scratch_operands = 0 : i64, tpu.core_type = #tpu.core_type<tc>} {
    %c0 = arith.constant 0 : index
    %c0_0 = arith.constant 0 : index
    %0 = vector.load %arg0[%c0, %c0_0] : memref<8x16xf32, #tpu.memory_space<vmem>>, vector<8x16xf32>
    %c0_1 = arith.constant 0 : index
    %c0_2 = arith.constant 0 : index
    %1 = vector.load %arg1[%c0_1, %c0_2] : memref<16x32xf32, #tpu.memory_space<vmem>>, vector<16x32xf32>
    %c0_3 = arith.constant 0 : index
    %c0_4 = arith.constant 0 : index
    %2 = vector.load %arg2[%c0_3, %c0_4] : memref<3x32xf32, #tpu.memory_space<vmem>>, vector<3x32xf32>
    %cst = arith.constant dense<0.000000e+00> : vector<8x32xf32>
    %3 = tpu.matmul %0, %1, %cst {dimension_numbers = #tpu.dot_dimension_numbers<[1], [0], [0], [1], [0, 0, 1, 1], [], []>} : vector<8x16xf32>, vector<16x32xf32>, vector<8x32xf32> -> vector<8x32xf32>
    %4 = vector.extract_strided_slice %2 {offsets = [0, 0], sizes = [1, 32], strides = [1, 1]} : vector<3x32xf32> to vector<1x32xf32>
    %5 = vector.broadcast %4 : vector<1x32xf32> to vector<8x32xf32>
    %6 = arith.addf %3, %5 : vector<8x32xf32>
    %cst_5 = arith.constant dense<0.000000e+00> : vector<32xf32>
    %7 = vector.multi_reduction <add>, %6, %cst_5 [0] : vector<8x32xf32> to vector<32xf32>
    %8 = vector.shape_cast %7 : vector<32xf32> to vector<1x32xf32>
    %cst_6 = arith.constant 8.000000e+00 : f32
    %9 = vector.broadcast %cst_6 : f32 to vector<1x32xf32>
    %10 = arith.divf %8, %9 : vector<1x32xf32>
    %11 = arith.mulf %6, %6 : vector<8x32xf32>
    %cst_7 = arith.constant dense<0.000000e+00> : vector<32xf32>
    %12 = vector.multi_reduction <add>, %11, %cst_7 [0] : vector<8x32xf32> to vector<32xf32>
    %13 = vector.shape_cast %12 : vector<32xf32> to vector<1x32xf32>
    %cst_8 = arith.constant 8.000000e+00 : f32
    %14 = vector.broadcast %cst_8 : f32 to vector<1x32xf32>
    %15 = arith.divf %13, %14 : vector<1x32xf32>
    %16 = arith.mulf %10, %10 : vector<1x32xf32>
    %17 = arith.subf %15, %16 : vector<1x32xf32>
    %cst_9 = arith.constant 0.000000e+00 : f32
    %18 = vector.broadcast %cst_9 : f32 to vector<1x32xf32>
    %19 = arith.maximumf %17, %18 : vector<1x32xf32>
    %20 = vector.broadcast %10 : vector<1x32xf32> to vector<8x32xf32>
    %21 = arith.subf %6, %20 : vector<8x32xf32>
    %cst_10 = arith.constant 9.99999974E-6 : f32
    %22 = vector.broadcast %cst_10 : f32 to vector<1x32xf32>
    %23 = arith.addf %19, %22 : vector<1x32xf32>
    %24 = math.rsqrt %23 : vector<1x32xf32>
    %25 = vector.broadcast %24 : vector<1x32xf32> to vector<8x32xf32>
    %26 = arith.mulf %21, %25 : vector<8x32xf32>
    %27 = vector.extract_strided_slice %2 {offsets = [1, 0], sizes = [1, 32], strides = [1, 1]} : vector<3x32xf32> to vector<1x32xf32>
    %28 = vector.broadcast %27 : vector<1x32xf32> to vector<8x32xf32>
    %29 = arith.mulf %28, %26 : vector<8x32xf32>
    %30 = vector.extract_strided_slice %2 {offsets = [2, 0], sizes = [1, 32], strides = [1, 1]} : vector<3x32xf32> to vector<1x32xf32>
    %31 = vector.broadcast %30 : vector<1x32xf32> to vector<8x32xf32>
    %32 = arith.addf %29, %31 : vector<8x32xf32>
    %cst_11 = arith.constant 0.000000e+00 : f32
    %33 = vector.broadcast %cst_11 : f32 to vector<8x32xf32>
    %34 = arith.maximumf %32, %33 : vector<8x32xf32>
    %c0_12 = arith.constant 0 : index
    %c0_13 = arith.constant 0 : index
    %35 = vector.load %arg3[%c0_12, %c0_13] : memref<32x64xf32, #tpu.memory_space<vmem>>, vector<32x64xf32>
    %c0_14 = arith.constant 0 : index
    %c0_15 = arith.constant 0 : index
    %36 = vector.load %arg4[%c0_14, %c0_15] : memref<3x64xf32, #tpu.memory_space<vmem>>, vector<3x64xf32>
    %cst_16 = arith.constant dense<0.000000e+00> : vector<8x64xf32>
    %37 = tpu.matmul %34, %35, %cst_16 {dimension_numbers = #tpu.dot_dimension_numbers<[1], [0], [0], [1], [0, 0, 1, 1], [], []>} : vector<8x32xf32>, vector<32x64xf32>, vector<8x64xf32> -> vector<8x64xf32>
    %38 = vector.extract_strided_slice %36 {offsets = [0, 0], sizes = [1, 64], strides = [1, 1]} : vector<3x64xf32> to vector<1x64xf32>
    %39 = vector.broadcast %38 : vector<1x64xf32> to vector<8x64xf32>
    %40 = arith.addf %37, %39 : vector<8x64xf32>
    %cst_17 = arith.constant dense<0.000000e+00> : vector<64xf32>
    %41 = vector.multi_reduction <add>, %40, %cst_17 [0] : vector<8x64xf32> to vector<64xf32>
    %42 = vector.shape_cast %41 : vector<64xf32> to vector<1x64xf32>
    %cst_18 = arith.constant 8.000000e+00 : f32
    %43 = vector.broadcast %cst_18 : f32 to vector<1x64xf32>
    %44 = arith.divf %42, %43 : vector<1x64xf32>
    %45 = arith.mulf %40, %40 : vector<8x64xf32>
    %cst_19 = arith.constant dense<0.000000e+00> : vector<64xf32>
    %46 = vector.multi_reduction <add>, %45, %cst_19 [0] : vector<8x64xf32> to vector<64xf32>
    %47 = vector.shape_cast %46 : vector<64xf32> to vector<1x64xf32>
    %cst_20 = arith.constant 8.000000e+00 : f32
    %48 = vector.broadcast %cst_20 : f32 to vector<1x64xf32>
    %49 = arith.divf %47, %48 : vector<1x64xf32>
    %50 = arith.mulf %44, %44 : vector<1x64xf32>
    %51 = arith.subf %49, %50 : vector<1x64xf32>
    %cst_21 = arith.constant 0.000000e+00 : f32
    %52 = vector.broadcast %cst_21 : f32 to vector<1x64xf32>
    %53 = arith.maximumf %51, %52 : vector<1x64xf32>
    %54 = vector.broadcast %44 : vector<1x64xf32> to vector<8x64xf32>
    %55 = arith.subf %40, %54 : vector<8x64xf32>
    %cst_22 = arith.constant 9.99999974E-6 : f32
    %56 = vector.broadcast %cst_22 : f32 to vector<1x64xf32>
    %57 = arith.addf %53, %56 : vector<1x64xf32>
    %58 = math.rsqrt %57 : vector<1x64xf32>
    %59 = vector.broadcast %58 : vector<1x64xf32> to vector<8x64xf32>
    %60 = arith.mulf %55, %59 : vector<8x64xf32>
    %61 = vector.extract_strided_slice %36 {offsets = [1, 0], sizes = [1, 64], strides = [1, 1]} : vector<3x64xf32> to vector<1x64xf32>
    %62 = vector.broadcast %61 : vector<1x64xf32> to vector<8x64xf32>
    %63 = arith.mulf %62, %60 : vector<8x64xf32>
    %64 = vector.extract_strided_slice %36 {offsets = [2, 0], sizes = [1, 64], strides = [1, 1]} : vector<3x64xf32> to vector<1x64xf32>
    %65 = vector.broadcast %64 : vector<1x64xf32> to vector<8x64xf32>
    %66 = arith.addf %63, %65 : vector<8x64xf32>
    %cst_23 = arith.constant 0.000000e+00 : f32
    %67 = vector.broadcast %cst_23 : f32 to vector<8x64xf32>
    %68 = arith.maximumf %66, %67 : vector<8x64xf32>
    %c0_24 = arith.constant 0 : index
    %c0_25 = arith.constant 0 : index
    %69 = vector.load %arg5[%c0_24, %c0_25] : memref<64x48xf32, #tpu.memory_space<vmem>>, vector<64x48xf32>
    %c0_26 = arith.constant 0 : index
    %c0_27 = arith.constant 0 : index
    %70 = vector.load %arg6[%c0_26, %c0_27] : memref<1x48xf32, #tpu.memory_space<vmem>>, vector<1x48xf32>
    %cst_28 = arith.constant dense<0.000000e+00> : vector<8x48xf32>
    %71 = tpu.matmul %68, %69, %cst_28 {dimension_numbers = #tpu.dot_dimension_numbers<[1], [0], [0], [1], [0, 0, 1, 1], [], []>} : vector<8x64xf32>, vector<64x48xf32>, vector<8x48xf32> -> vector<8x48xf32>
    %72 = vector.broadcast %70 : vector<1x48xf32> to vector<8x48xf32>
    %73 = arith.addf %71, %72 : vector<8x48xf32>
    %74 = arith.negf %73 : vector<8x48xf32>
    %75 = math.exp %74 : vector<8x48xf32>
    %cst_29 = arith.constant 1.000000e+00 : f32
    %76 = vector.broadcast %cst_29 : f32 to vector<8x48xf32>
    %77 = arith.addf %76, %75 : vector<8x48xf32>
    %78 = arith.divf %76, %77 : vector<8x48xf32>
    %c0_30 = arith.constant 0 : index
    %c0_31 = arith.constant 0 : index
    %79 = vector.load %arg7[%c0_30, %c0_31] : memref<8x48xf32, #tpu.memory_space<vmem>>, vector<8x48xf32>
    tpu.vector_store %arg7[%c0_30, %c0_31], %78 {strides = array<i32>} : memref<8x48xf32, #tpu.memory_space<vmem>>, vector<8x48xf32>,
    return
  }
}

</mosaic_0001>

<bundles_post_ra>
// kernel: decoder_forward.1
= control target key start
LH: loop header
LB: loop body
LE: loop exit
PB: predicated region body
PF: predicated region fallthrough
CT: control target
= control target key end

     0   :  { %v490_v2 = vmov 0.0|0.0   ;;  %vm491_vm0 = vmmov 0   ;;  %v492_v4 = vmov 0.0   ;;  %s618_s0 = inlined_call_operand.vmem [shape: f32[8,16], index: 0, kind: input, shape index: {}]   ;;  %s619_s1 = inlined_call_operand.vmem [shape: f32[16,32], index: 1, kind: input, shape index: {}]   ;;  %s620_s2 = inlined_call_operand.vmem [shape: f32[3,32], index: 2, kind: input, shape index: {}]   ;;  %s621_s3 = inlined_call_operand.vmem [shape: f32[32,64], index: 3, kind: input, shape index: {}]   ;;  %s622_s4 = inlined_call_operand.vmem [shape: f32[3,64], index: 4, kind: input, shape index: {}]   ;;  %s623_s5 = inlined_call_operand.vmem [shape: f32[64,48], index: 5, kind: input, shape index: {}]   ;;  %s624_s6 = inlined_call_operand.vmem [shape: f32[1,48], index: 6, kind: input, shape index: {}]   ;;  %s625_s7 = inlined_call_operand.hbm [shape: f32[8,48], index: 7, kind: output, shape index: {}]  }
   0x1   :  { %v28_v0 = vld [vmem:[%s619_s1] sm:$0xff]  ;;  %v29_v1 = vld [vmem:[%s619_s1 + $0x8] sm:$0xff]  ;;  %433 = vmatprep.subr.bf16.mxu1 %v490_v2  ;;  %400 = vmatprep.mubr.msk.f32.mxu1 %vm491_vm0, %v492_v4 }
   0x2   :  { %v434_v3 = vpack.c.bf16 %v29_v1, %v28_v0 }
   0x3   :  { %12 = vsyncpa [#allocation3], 0  ;;  %442 = vmatprep.subr.bf16.mxu0 %v490_v2  ;;  %430 = vmatprep.mubr.msk.f32.mxu0 %vm491_vm0, %v492_v4  ;;  %v27_v5 = vld [vmem:[%s618_s0] sm:$0xff]  ;;  %vm35_vm1 = vcmask 130048   ;;  %v147_v7 = vld [vmem:[%s621_s3 + $0x8] sm:$0xff]  ;;  %v31_v12 = vlaneseq  ;;  %vm109_vm2 = vcmask 261120  }
   0x4   :  { %435 = vmatpush3.bf16.msra.mxu1 %v434_v3  ;;  %v146_v6 = vld [vmem:[%s621_s3] sm:$0xff]  ;;  %v148_v9 = vld [vmem:[%s621_s3 + $0x10] sm:$0xff]  ;;  %v149_v10 = vld [vmem:[%s621_s3 + $0x18] sm:$0xff]  ;;  %vm228_vm3 = vcmask 523264   ;;  %s493_s30 = smov [#allocation2]   ;;  %vm358_vm4 = vcmask 392192  }
   0x5   :  { %436 = vmatprep.subr.bf16.mxu1 %v490_v2  ;;  %v437_v8 = vpack.c.bf16 %v147_v7, %v146_v6  ;;  %v440_v11 = vpack.c.bf16 %v149_v10, %v148_v9  ;;  %v559_v13 = vshrl.u32 %v31_v12, 7  ;;  %v30_v15 = vld [vmem:[%s620_s2] sm:$0x7]  ;;  %v265_v52 = vld [vmem:[%s623_s5 + $0x8] sm:$0xff]  ;;  %v266_v53 = vld [vmem:[%s623_s5 + $0x10] sm:$0xff]  ;;  %s366_s8 = sshll.u32 %s493_s30, 4  ;;  %s367_s8 = int_to_ptr.vmem [resolvable:$true] %s366_s8 }
   0x6   :  { %v264_v51 = vld [vmem:[%s623_s5] sm:$0xff]  ;;  %v267_v55 = vld [vmem:[%s623_s5 + $0x18] sm:$0xff]  ;;  %v269_v58 = vld [vmem:[%s623_s5 + $0x28] sm:$0xff]  ;;  %s466_s9 = scalar_lea.vmem %s367_s8, 128  ;;  %p471_p1 = scmp.lt.s32.totalorder %s367_s8, %s367_s8 }
   0x7   :  { %401 = vmatmul.mubr.msk.f32.vlgmr.msra.gmra.mrb[0].mxu1 %vm35_vm1, %v27_v5  ;;  %v33_v14 = vsub.s32 0, %v559_v13  ;;  %v137_v41 = vsub.s32 1, %v559_v13  ;;  %v142_v42 = vsub.s32 2, %v559_v13  ;;  %v443_v54 = vpack.c.bf16 %v265_v52, %v264_v51  ;;  %v268_v57 = vld [vmem:[%s623_s5 + $0x20] sm:$0xff]  ;;  %v270_v60 = vld [vmem:[%s623_s5 + $0x30] sm:$0xff]  ;;  %v271_v61 = vld [vmem:[%s623_s5 + $0x38] sm:$0xff]  ;;  %p467_p0 = scmp.ne.s32.totalorder %s367_s8, %s466_s9  ;;  %p472_p2 = scmp.lt.s32.totalorder %s466_s9, %s466_s9 }
   0x8   :  { %411 = vmatprep.mubr.msk.f32.mxu1 %vm491_vm0, %v492_v4  ;;  %438 = vmatpush3.bf16.msra.mxu1 %v437_v8  ;;  %v446_v56 = vpack.c.bf16 %v267_v55, %v266_v53  ;;  %v449_v59 = vpack.c.bf16 %v269_v58, %v268_v57  ;;  %v452_v62 = vpack.c.bf16 %v271_v61, %v270_v60  ;;  %v150_v63 = vld [vmem:[%s622_s4] sm:$0x7] }
   0x9   :  { %439 = vmatprep.subr.bf16.mxu1 %v490_v2  ;;  %v34_v16 = vrot.slane %v30_v15, %v33_v14  ;;  %v138_v44 = vrot.slane %v30_v15, %v137_v41  ;;  %v143_v47 = vrot.slane %v30_v15, %v142_v42  ;;  %444 = vmatpush3.bf16.msra.mxu0 %v443_v54  ;;  %p473_p3 = por %p472_p2, %p471_p1 }
   0xa   :  { %445 = vmatprep.subr.bf16.mxu0 %v490_v2  ;;  %v154_v0 = vrot.slane %v150_v63, %v33_v14 }
   0xb   :  { %p474_p4 = pnand %p473_p3, %p467_p0 }
   0xc   :  { %441 = vmatpush3.bf16.msra.mxu1 %v440_v11 }
   0xd   :  { %447 = vmatpush3.bf16.msra.mxu0 %v446_v56 }
   0xe   :  { %448 = vmatprep.subr.bf16.mxu0 %v490_v2 }
  0x11   :  { %450 = vmatpush3.bf16.msra.mxu0 %v449_v59 }
  0x12   :  { %451 = vmatprep.subr.bf16.mxu0 %v490_v2 }
  0x15   :  { %453 = vmatpush3.bf16.msra.mxu0 %v452_v62 }
  0xda   :  { %v105_v17 = vpop.f32.mrb[0].mxu1 }
  0xdb   :  { %v106_v18 = vadd.f32 %v105_v17, %v34_v16  ;;  %v402_v19 = vpop.f32.mrb[1].mxu1 }
  0xdd   :  { %v110_v20 = vsel %vm109_vm2, %v106_v18, 0.0  ;;  %v119_v21 = vmul.f32 %v106_v18, %v106_v18 }
  0xde   :  { %v111_v22 = vrot.slane %v110_v20, 4 }
  0xdf   :  { %v120_v23 = vsel %vm109_vm2, %v119_v21, 0.0 }
  0xe0   :  { %v112_v24 = vadd.f32 %v111_v22, %v110_v20  ;;  %v121_v25 = vrot.slane %v120_v23, 4 }
  0xe2   :  { %v113_v26 = vrot.slane %v112_v24, 2  ;;  %v122_v27 = vadd.f32 %v121_v25, %v120_v23  ;;  %v256_v25 = vrot.slane %v150_v63, %v137_v41 }
  0xe4   :  { %v114_v28 = vadd.f32 %v113_v26, %v112_v24  ;;  %v123_v29 = vrot.slane %v122_v27, 2 }
  0xe6   :  { %v115_v30 = vrot.slane %v114_v28, 1  ;;  %v124_v31 = vadd.f32 %v123_v29, %v122_v27 }
  0xe8   :  { %v116_v32 = vadd.f32 %v115_v30, %v114_v28  ;;  %v125_v33 = vrot.slane %v124_v31, 1  ;;  %v261_v28 = vrot.slane %v150_v63, %v142_v42 }
  0xea   :  { %v118_v34 = vmul.f32 0.125, %v116_v32  ;;  %v126_v35 = vadd.f32 %v125_v33, %v124_v31  ;;  %v376_v33 = vld [vmem:[%s624_s6] ss:$0 sm:$0xff] }
  0xec   :  { %v127_v36 = vmul.f32 0.125, %v126_v35  ;;  %v128_v37 = vmul.f32 %v118_v34, %v118_v34  ;;  %v131_v43 = vsub.f32 %v106_v18, %v118_v34 }
  0xee   :  { %v129_v38 = vsub.f32 %v127_v36, %v128_v37 }
  0xf0   :  { %v130_v39 = vmax.f32 %v129_v38, 0.0 }
  0xf2   :  { %v132_v40 = vadd.f32 1e-05, %v130_v39 }
  0xf4   :  { %458 = vrsqrt.f32 %v132_v40 }
  0xfe   :  { %v459_v45 = vpop.eup %458 }
  0xff   :  { %v134_v46 = vmul.f32 %v459_v45, %v131_v43 }
 0x101   :  { %v139_v48 = vmul.f32 %v138_v44, %v134_v46 }
 0x103   :  { %v144_v49 = vadd.f32 %v143_v47, %v139_v48 }
 0x105   :  { %v145_v50 = vmax.f32 %v144_v49, 0.0 }
 0x107   :  { %412 = vmatmul.mubr.msk.f32.vlgmr.msra.gmra.mrb[2].mxu1 %vm109_vm2, %v145_v50 }
 0x1da   :  { %v224_v1 = vpop.f32.mrb[2].mxu1 }
 0x1db   :  { %v225_v3 = vadd.f32 %v224_v1, %v154_v0  ;;  %v413_v4 = vpop.f32.mrb[3].mxu1 }
 0x1dd   :  { %v237_v5 = vmul.f32 %v225_v3, %v225_v3  ;;  %v229_v6 = vsel %vm228_vm3, %v225_v3, 0.0 }
 0x1de   :  { %v230_v7 = vrot.slane %v229_v6, 4 }
 0x1df   :  { %v238_v8 = vsel %vm228_vm3, %v237_v5, 0.0 }
 0x1e0   :  { %v231_v9 = vadd.f32 %v230_v7, %v229_v6  ;;  %v239_v10 = vrot.slane %v238_v8, 4 }
 0x1e2   :  { %v232_v11 = vrot.slane %v231_v9, 2  ;;  %v240_v2 = vadd.f32 %v239_v10, %v238_v8 }
 0x1e4   :  { %v233_v12 = vadd.f32 %v232_v11, %v231_v9  ;;  %v241_v13 = vrot.slane %v240_v2, 2 }
 0x1e6   :  { %v234_v15 = vrot.slane %v233_v12, 1  ;;  %v242_v16 = vadd.f32 %v241_v13, %v240_v2 }
 0x1e8   :  { %v235_v17 = vadd.f32 %v234_v15, %v233_v12  ;;  %v243_v14 = vrot.slane %v242_v16, 1 }
 0x1ea   :  { %v236_v18 = vmul.f32 0.125, %v235_v17  ;;  %v244_v19 = vadd.f32 %v243_v14, %v242_v16 }
 0x1ec   :  { %v245_v20 = vmul.f32 0.125, %v244_v19  ;;  %v246_v21 = vmul.f32 %v236_v18, %v236_v18  ;;  %v249_v26 = vsub.f32 %v225_v3, %v236_v18 }
 0x1ee   :  { %v247_v22 = vsub.f32 %v245_v20, %v246_v21 }
 0x1f0   :  { %v248_v23 = vmax.f32 %v247_v22, 0.0 }
 0x1f2   :  { %v250_v24 = vadd.f32 1e-05, %v248_v23 }
 0x1f4   :  { %460 = vrsqrt.f32 %v250_v24 }
 0x1fe   :  { %v461_v27 = vpop.eup %460 }
 0x1ff   :  { %v252_v29 = vmul.f32 %v461_v27, %v249_v26 }
 0x201   :  { %v257_v30 = vmul.f32 %v256_v25, %v252_v29 }
 0x203   :  { %v262_v31 = vadd.f32 %v261_v28, %v257_v30 }
 0x205   :  { %v263_v32 = vmax.f32 %v262_v31, 0.0 }
 0x207   :  { %431 = vmatmul.mubr.msk.f32.vlgmr.msra.gmra.mrb[0].mxu0 %vm228_vm3, %v263_v32 }
 0x2da   :  { %v348_v34 = vpop.f32.mrb[0].mxu0 }
 0x2db   :  { %v349_v35 = vadd.f32 %v376_v33, %v348_v34  ;;  %v432_v36 = vpop.f32.mrb[1].mxu0 }
 0x2dd   :  { %v378_v37 = vmul.f32 -1.442695, %v349_v35 }
 0x2df   :  { %462 = vpow2.f32 %v378_v37 }
 0x2e9   :  { %v463_v38 = vpop.eup %462 }
 0x2ea   :  { %v355_v39 = vadd.f32 1.0, %v463_v38 }
 0x2ec   :  { %464 = vrcp.f32 %v355_v39 }
 0x2f6   :  { %v465_v40 = vpop.eup %464 }
 0x2f7   :  { %359 = vst.msk [vmem:[#allocation2] sm:$0xff] %vm358_vm4, %v465_v40 }
 0x2f8   :  { %477 = shalt.err (!%p474_p4)
}
 0x2f9   :  { %s478_s11 = scalar_lea.hbm %s625_s7, 128 }
 0x2fa   :  { %p479_p5 = scmp.ne.s32.totalorder %s625_s7, %s478_s11  ;;  %p482_p6 = scmp.lt.u32.totalorder %s478_s11, %s625_s7 }
 0x2fc   :  { %p484_p7 = pnand %p482_p6, %p479_p5 }
 0x2fe   :  { %487 = shalt.err (!%p484_p7)
}
 0x2ff   :  { %369 = dma.vmem_to_hbm [thread:$0]  %s367_s8, 128, %s625_s7, [#allocation3]  }
 0x300   :  { %488 = dma.done.wait [#allocation3], 128  }
 0x301   :  { %489 = vsyncadd [#allocation3], 4294967168 }
 0x302   :  { %373 = vsyncpa [#allocation3], 1 }

</bundles_post_ra>
